<compile_context>
chip_gen: v5e
topology: v5e:2x2
jax: 0.10.0
libtpu: 0.0.40
codegen_flags: <defaults>
</compile_context>

<pallas_src>
import jax
import jax.numpy as jnp
from jax import lax
from jax.experimental import pallas as pl
from jax.experimental.pallas import tpu as pltpu


def _round_up(n, m):
    return (n + m - 1) // m * m


def mlp_kernel(x_ref, w1t_ref, b1_ref, w2t_ref, b2_ref, o_ref):
    """One batch tile: out = ReLU(x @ W1^T + b1) @ W2^T + b2.

    The (TM, K) x tile is processed in <=128-row sub-chunks so the f32
    intermediate `h` never exceeds 128 x Hp -> no vreg spills at TM=512.
    """
    tm = x_ref.shape[0]
    chunk = min(tm, 128)
    n_chunks = tm // chunk            # TM is always a multiple of chunk

    # Hoist resident weights / biases out of the chunk loop.
    w1t = w1t_ref[...]                # (K, Hp)  bf16
    w2t = w2t_ref[...]                # (Hp, Np) bf16
    b1 = b1_ref[...]                  # (1, Hp)  f32
    b2 = b2_ref[...]                  # (1, Np)  f32

    def body(c, carry):
        r = pl.multiple_of(c * chunk, chunk)
        xb = x_ref[pl.ds(r, chunk), :].astype(jnp.bfloat16)       # in-kernel cast
        h = jnp.dot(xb, w1t, preferred_element_type=jnp.float32)  # MXU, f32 acc
        h = jnp.maximum(h + b1, 0.0)                              # f32 bias + ReLU
        out = jnp.dot(h.astype(jnp.bfloat16), w2t,
                      preferred_element_type=jnp.float32)         # MXU, f32 acc
        o_ref[pl.ds(r, chunk), :] = (out + b2).astype(o_ref.dtype)
        return carry

    lax.fori_loop(0, n_chunks, body, None, unroll=True)


def prepare_params(w1, b1, w2, b2):
    """One-time (off the hot path) padding / transpose / bf16 cast of weights.
    w1: [hidden, input]; b1: [hidden]; w2: [output, hidden]; b2: [output]."""
    hidden, in_dim = w1.shape
    out_dim = w2.shape[0]
    # TODO(synk): if hidden/output ever exceed 128, round the matmul N dims to 256
    # on v6e/v7x (2x256x256 MXU); 128 multiples are only optimal on v5e.
    K = _round_up(in_dim, 128)
    H = _round_up(hidden, 128)
    N = _round_up(out_dim, 128)

    w1t = jnp.zeros((K, H), jnp.bfloat16).at[:in_dim, :hidden].set(
        w1.T.astype(jnp.bfloat16))
    w2t = jnp.zeros((H, N), jnp.bfloat16).at[:hidden, :out_dim].set(
        w2.T.astype(jnp.bfloat16))
    b1p = jnp.zeros((1, H), jnp.float32).at[0, :hidden].set(b1.astype(jnp.float32))
    b2p = jnp.zeros((1, N), jnp.float32).at[0, :out_dim].set(b2.astype(jnp.float32))
    return dict(w1t=w1t, b1=b1p, w2t=w2t, b2=b2p,
                in_dim=in_dim, hidden=hidden, out_dim=out_dim)


def _pick_tm(batch):
    if batch <= 128:
        # Single tile; 16-row granularity keeps both f32 (8) and bf16 (16)
        # sublane packing happy.
        return _round_up(max(batch, 16), 16)
    # Big batch: large tiles amortize the ~0.35us per-grid-step overhead, but keep
    # at least 2 tiles so the "parallel" batch axis can split across v7x's 2 TCs.
    half = _round_up(-(-batch // 2), 128)
    return min(512, half)


def mlp_forward(x, params, out_dtype=jnp.bfloat16):
    """x: [B, C, H, W] (or already [B, input_dim]); params from prepare_params."""
    B = x.shape[0]
    x2d = x.reshape(B, -1)                       # torch: x.view(x.size(0), -1)
    in_dim = params["in_dim"]
    assert x2d.shape[1] == in_dim

    K, Hp = params["w1t"].shape                  # padded input / hidden dims
    Np = params["w2t"].shape[1]                  # padded output dim
    out_dim = params["out_dim"]

    if in_dim != K:
        # Rare path: feature dim not a multiple of 128 -> must zero-pad K columns
        # (padded weight rows are 0, but garbage*0 could be NaN, so pad explicitly).
        x2d = jnp.zeros((B, K), x2d.dtype).at[:, :in_dim].set(x2d)

    # TODO(synk): for B < ~64 a plain fused jnp dot is as fast (single-tile launch
    # overhead dominates); the Pallas path is kept here so the kernel always runs.
    TM = _pick_tm(B)
    grid = (pl.cdiv(B, TM),)

    # Weights are small (<1 MiB) and resident in VMEM (constant index_map); only
    # the x / out tiles stream.  No padded copy of x: the ragged last batch tile
    # is handled by the pipeline's masked writeback.
    # TODO(synk): for large input/hidden dims, switch to a (batch, N-tile, K-tile)
    # grid with a VMEM f32 accumulator, reduction axis last ("arbitrary"), and
    # budget tiles against v7x's 64 MiB VMEM with 2x double-buffering per operand.
    out = pl.pallas_call(
        mlp_kernel,
        out_shape=jax.ShapeDtypeStruct((B, Np), out_dtype),
        grid_spec=pltpu.PrefetchScalarGridSpec(
            num_scalar_prefetch=0,
            grid=grid,
            in_specs=[
                pl.BlockSpec((TM, K), lambda i: (i, 0)),   # x tile (pipelined)
                pl.BlockSpec((K, Hp), lambda i: (0, 0)),   # W1^T (resident)
                pl.BlockSpec((1, Hp), lambda i: (0, 0)),   # b1
                pl.BlockSpec((Hp, Np), lambda i: (0, 0)),  # W2^T (resident)
                pl.BlockSpec((1, Np), lambda i: (0, 0)),   # b2
            ],
            out_specs=pl.BlockSpec((TM, Np), lambda i: (i, 0)),
        ),
        compiler_params=pltpu.CompilerParams(
            dimension_semantics=("parallel",),
            vmem_limit_bytes=32 * 1024 * 1024,   # safe on v7x's smaller VMEM too
        ),
    )(x2d, params["w1t"], params["b1"], params["w2t"], params["b2"])

    return out[:, :out_dim]


def init_params(key, input_dim, hidden_dim, output_dim, dtype=jnp.float32):
    # Mimics nn.Linear's uniform(-1/sqrt(fan_in), 1/sqrt(fan_in)) init.
    k1, k2, k3, k4 = jax.random.split(key, 4)
    bound1 = 1.0 / (input_dim ** 0.5)
    bound2 = 1.0 / (hidden_dim ** 0.5)
    w1 = jax.random.uniform(k1, (hidden_dim, input_dim), dtype, -bound1, bound1)
    b1 = jax.random.uniform(k2, (hidden_dim,), dtype, -bound1, bound1)
    w2 = jax.random.uniform(k3, (output_dim, hidden_dim), dtype, -bound2, bound2)
    b2 = jax.random.uniform(k4, (output_dim,), dtype, -bound2, bound2)
    return w1, b1, w2, b2


if __name__ == "__main__":
    key = jax.random.PRNGKey(0)
    kx, kp, kx2 = jax.random.split(key, 3)

    # Input consistent with the module's forward (flattened NCHW image batch).
    B, C, Hh, Ww = 2, 4, 16, 16
    input_dim = C * Hh * Ww      # 1024
    hidden_dim = 32
    output_dim = 16

    x = jax.random.normal(kx, (B, C, Hh, Ww), jnp.float32)
    w1, b1, w2, b2 = init_params(kp, input_dim, hidden_dim, output_dim)
    params = prepare_params(w1, b1, w2, b2)      # one-time weight prep

    out = mlp_forward(x, params)
    jax.block_until_ready(out)
    assert out.shape == (B, output_dim)

    def ref_bf16_math(xf):
        # Mirrors the kernel: bf16 MXU operands, f32 accumulation, f32 epilogue.
        x2d_ = xf.reshape(xf.shape[0], -1)
        xb = x2d_.astype(jnp.bfloat16).astype(jnp.float32)
        w1b = w1.astype(jnp.bfloat16).astype(jnp.float32)
        w2b = w2.astype(jnp.bfloat16).astype(jnp.float32)
        h = jnp.maximum(xb @ w1b.T + b1, 0.0)
        return h.astype(jnp.bfloat16).astype(jnp.float32) @ w2b.T + b2

    out_f32 = out.astype(jnp.float32)
    ref = ref_bf16_math(x)
    assert jnp.allclose(out_f32, ref, atol=3e-2, rtol=3e-2), \
        float(jnp.max(jnp.abs(out_f32 - ref)))

    # Loose sanity check against the full-f32 PyTorch-module math.
    x2d = x.reshape(B, -1)
    ref_f32 = jnp.maximum(x2d @ w1.T + b1, 0.0) @ w2.T + b2
    assert jnp.allclose(out_f32, ref_f32, atol=1.5e-1, rtol=1.5e-1)

    # Larger batch: exercises 256-row tiles, a 2-tile "parallel" grid (both v7x TCs),
    # the in-kernel 128-row chunk loop, and a ragged (masked) last batch tile.
    B2 = 384
    x_big = jax.random.normal(kx2, (B2, input_dim), jnp.float32)
    out_big = mlp_forward(x_big, params)
    jax.block_until_ready(out_big)
    assert out_big.shape == (B2, output_dim)
    ref_big = ref_bf16_math(x_big)
    assert jnp.allclose(out_big.astype(jnp.float32), ref_big, atol=3e-2, rtol=3e-2)

    print("KERNEL_OK")
</pallas_src>

<mosaic_0001>
module attributes {stable_mosaic.version = 11 : i64} {
  func.func @mlp_kernel(%arg0: i32, %arg1: memref<16x1024xf32, #tpu.memory_space<vmem>>, %arg2: memref<1024x128xbf16, #tpu.memory_space<vmem>>, %arg3: memref<1x128xf32, #tpu.memory_space<vmem>>, %arg4: memref<128x128xbf16, #tpu.memory_space<vmem>>, %arg5: memref<1x128xf32, #tpu.memory_space<vmem>>, %arg6: memref<16x128xbf16, #tpu.memory_space<vmem>>) attributes {dimension_semantics = [#tpu.dimension_semantics<parallel>], iteration_bounds = array<i64: 1>, scalar_prefetch = 0 : i64, scratch_operands = 0 : i64, tpu.core_type = #tpu.core_type<tc>, window_params = [{transform_indices = @transform_0, window_bounds = array<i64: 16, 1024>}, {pipeline_mode = #tpu.pipeline_mode<synchronous>, transform_indices = @transform_1, window_bounds = array<i64: 1024, 128>}, {pipeline_mode = #tpu.pipeline_mode<synchronous>, transform_indices = @transform_2, window_bounds = array<i64: 1, 128>}, {pipeline_mode = #tpu.pipeline_mode<synchronous>, transform_indices = @transform_3, window_bounds = array<i64: 128, 128>}, {pipeline_mode = #tpu.pipeline_mode<synchronous>, transform_indices = @transform_4, window_bounds = array<i64: 1, 128>}, {transform_indices = @transform_5, window_bounds = array<i64: 16, 128>}]} {
    %c0 = arith.constant 0 : index
    %c0_0 = arith.constant 0 : index
    %0 = vector.load %arg2[%c0, %c0_0] : memref<1024x128xbf16, #tpu.memory_space<vmem>>, vector<1024x128xbf16>
    %c0_1 = arith.constant 0 : index
    %c0_2 = arith.constant 0 : index
    %1 = vector.load %arg4[%c0_1, %c0_2] : memref<128x128xbf16, #tpu.memory_space<vmem>>, vector<128x128xbf16>
    %c0_3 = arith.constant 0 : index
    %c0_4 = arith.constant 0 : index
    %2 = vector.load %arg3[%c0_3, %c0_4] : memref<1x128xf32, #tpu.memory_space<vmem>>, vector<1x128xf32>
    %c0_5 = arith.constant 0 : index
    %c0_6 = arith.constant 0 : index
    %3 = vector.load %arg5[%c0_5, %c0_6] : memref<1x128xf32, #tpu.memory_space<vmem>>, vector<1x128xf32>
    %c0_i32 = arith.constant 0 : i32
    %c16_i32 = arith.constant 16 : i32
    %4 = arith.muli %c0_i32, %c16_i32 : i32
    %5 = tpu.assume_multiple %4, 16 : i32
    %6 = arith.index_cast %5 : i32 to index
    %c0_7 = arith.constant 0 : index
    %7 = vector.load %arg1[%6, %c0_7] : memref<16x1024xf32, #tpu.memory_space<vmem>>, vector<16x1024xf32>
    %8 = arith.truncf %7 : vector<16x1024xf32> to vector<16x1024xbf16>
    %cst = arith.constant dense<0.000000e+00> : vector<16x128xf32>
    %9 = tpu.matmul %8, %0, %cst {dimension_numbers = #tpu.dot_dimension_numbers<[1], [0], [0], [1], [0, 0, 1, 1], [], []>} : vector<16x1024xbf16>, vector<1024x128xbf16>, vector<16x128xf32> -> vector<16x128xf32>
    %10 = vector.broadcast %2 : vector<1x128xf32> to vector<16x128xf32>
    %11 = arith.addf %9, %10 : vector<16x128xf32>
    %cst_8 = arith.constant 0.000000e+00 : f32
    %12 = vector.broadcast %cst_8 : f32 to vector<16x128xf32>
    %13 = arith.maximumf %11, %12 : vector<16x128xf32>
    %14 = arith.truncf %13 : vector<16x128xf32> to vector<16x128xbf16>
    %cst_9 = arith.constant dense<0.000000e+00> : vector<16x128xf32>
    %15 = tpu.matmul %14, %1, %cst_9 {dimension_numbers = #tpu.dot_dimension_numbers<[1], [0], [0], [1], [0, 0, 1, 1], [], []>} : vector<16x128xbf16>, vector<128x128xbf16>, vector<16x128xf32> -> vector<16x128xf32>
    %16 = vector.broadcast %3 : vector<1x128xf32> to vector<16x128xf32>
    %17 = arith.addf %15, %16 : vector<16x128xf32>
    %18 = arith.truncf %17 : vector<16x128xf32> to vector<16x128xbf16>
    %19 = arith.index_cast %5 : i32 to index
    %c0_10 = arith.constant 0 : index
    %20 = vector.load %arg6[%19, %c0_10] : memref<16x128xbf16, #tpu.memory_space<vmem>>, vector<16x128xbf16>
    tpu.vector_store %arg6[%19, %c0_10], %18 {strides = array<i32>} : memref<16x128xbf16, #tpu.memory_space<vmem>>, vector<16x128xbf16>,
    %c1_i32 = arith.constant 1 : i32
    return
  }
  func.func @transform_0(%arg0: i32) -> (i32, i32) {
    %c0_i32 = arith.constant 0 : i32
    %c0_i32_0 = arith.constant 0 : i32
    return %arg0, %c0_i32 : i32, i32
  }
  func.func @transform_1(%arg0: i32) -> (i32, i32) {
    %c0_i32 = arith.constant 0 : i32
    %c0_i32_0 = arith.constant 0 : i32
    %c0_i32_1 = arith.constant 0 : i32
    return %c0_i32, %c0_i32_0 : i32, i32
  }
  func.func @transform_2(%arg0: i32) -> (i32, i32) {
    %c0_i32 = arith.constant 0 : i32
    %c0_i32_0 = arith.constant 0 : i32
    %c0_i32_1 = arith.constant 0 : i32
    return %c0_i32, %c0_i32_0 : i32, i32
  }
  func.func @transform_3(%arg0: i32) -> (i32, i32) {
    %c0_i32 = arith.constant 0 : i32
    %c0_i32_0 = arith.constant 0 : i32
    %c0_i32_1 = arith.constant 0 : i32
    return %c0_i32, %c0_i32_0 : i32, i32
  }
  func.func @transform_4(%arg0: i32) -> (i32, i32) {
    %c0_i32 = arith.constant 0 : i32
    %c0_i32_0 = arith.constant 0 : i32
    %c0_i32_1 = arith.constant 0 : i32
    return %c0_i32, %c0_i32_0 : i32, i32
  }
  func.func @transform_5(%arg0: i32) -> (i32, i32) {
    %c0_i32 = arith.constant 0 : i32
    %c0_i32_0 = arith.constant 0 : i32
    return %arg0, %c0_i32 : i32, i32
  }
}

</mosaic_0001>

<bundles_post_ra>
// kernel: tpu_custom_call.1
= control target key start
LH: loop header
LB: loop body
LE: loop exit
PB: predicated region body
PF: predicated region fallthrough
CT: control target
= control target key end

     0   :  { %10 = vsyncpa [#allocation3], 0  ;;  %s1508_s0 = inlined_call_operand.hbm [shape: f32[2,1024], index: 0, kind: input, shape index: {}]   ;;  %s1509_s1 = inlined_call_operand.hbm [shape: bf16[1024,128], index: 1, kind: input, shape index: {}]   ;;  %s1510_s2 = inlined_call_operand.vmem [shape: f32[1,128], index: 2, kind: input, shape index: {}]   ;;  %s1511_s3 = inlined_call_operand.hbm [shape: bf16[128,128], index: 3, kind: input, shape index: {}]   ;;  %s1512_s4 = inlined_call_operand.vmem [shape: f32[1,128], index: 4, kind: input, shape index: {}]   ;;  %s1513_s5 = inlined_call_operand.hbm [shape: bf16[2,128], index: 5, kind: output, shape index: {}]  }
   0x1   :  { %11 = vsyncpa [#allocation6], 0 }
   0x2   :  { %12 = vsyncpa [#allocation4], 0  ;;  %s30_s20 = sshll.u32 %s1509_s1, 4  ;;  %s31_s20 = int_to_ptr.hbm [resolvable:$true] %s30_s20 }
   0x3   :  { %16 = vsyncadd [#allocation3], 1792  ;;  %s1422_s21 = smov [#allocation5]   ;;  %s17_s25 = sshll.u32 %s1508_s0, 4  ;;  %s18_s25 = int_to_ptr.hbm [resolvable:$true] %s17_s25 }
   0x4   :  { %s32_s22 = sshll.u32 %s1422_s21, 4  ;;  %s1423_s26 = smov 64   ;;  %s33_s22 = int_to_ptr.vmem [resolvable:$true] %s32_s22 }
   0x5   :  { %s1424_s27 = smov 4   ;;  %s1425_s28 = smov [#allocation2]  }
   0x6   :  { %38 = dma.hbm_to_vmem [thread:$0]  %s31_s20, 8192, %s33_s22, [#allocation6], %s1423_s26, %s1423_s26, %s1424_s27  }
   0x7   :  { %s19_s29 = sshll.u32 %s1425_s28, 4  ;;  %s1426_s30 = smov 256   ;;  %s20_s29 = int_to_ptr.vmem [resolvable:$true] %s19_s29 }
   0x8   :  { %s1427_s6 = smov 16   ;;  %s45_s8 = sshll.u32 %s1511_s3, 4  ;;  %s46_s8 = int_to_ptr.hbm [resolvable:$true] %s45_s8 }
   0x9   :  { %25 = dma.hbm_to_vmem [thread:$0]  %s18_s25, 256, %s20_s29, [#allocation3], %s1426_s30, %s1426_s30, %s1427_s6  }
   0xa   :  { %s1428_s9 = smov [#allocation7]  }
   0xb   :  { %s47_s10 = sshll.u32 %s1428_s9, 4  ;;  %s48_s10 = int_to_ptr.vmem [resolvable:$true] %s47_s10 }
   0xc   :  { %53 = dma.hbm_to_vmem [thread:$0]  %s46_s8, 1024, %s48_s10, [#allocation6], %s1423_s26, %s1423_s26, %s1424_s27  }
   0xd   :  { %1416 = dma.done.wait [#allocation3], 2048  }
   0xe   :  { %1417 = vsyncadd [#allocation3], 4294965248 }
   0xf   :  { %1418 = dma.done.wait [#allocation6], 9216  }
  0x10   :  { %1419 = vsyncadd [#allocation6], 4294958080  ;;  %v1244_v0 = vld [vmem:[#allocation5 + $0x38] sm:$0xff]  ;;  %v1243_v4 = vld [vmem:[#allocation5 + $0x30] sm:$0xff]  ;;  %vm885_vm0 = vcmask 1040384   ;;  %vm889_vm1 = vcmask 1041409  }
  0x11   :  { %v1252_v1 = vld [vmem:[#allocation5 + $0x78] sm:$0xff]  ;;  %699 = vmatpush.bf16.msra.mxu0 %v1244_v0  ;;  %v1251_v5 = vld [vmem:[#allocation5 + $0x70] sm:$0xff]  ;;  %v1242_v8 = vld [vmem:[#allocation5 + $0x28] sm:$0xff]  ;;  %vm893_vm2 = vcmask 1042434   ;;  %vm897_vm3 = vcmask 1043459  }
  0x12   :  { %v1260_v2 = vld [vmem:[#allocation5 + $0xb8] sm:$0xff]  ;;  %713 = vmatpush.bf16.msra.mxu1 %v1252_v1  ;;  %v1259_v6 = vld [vmem:[#allocation5 + $0xb0] sm:$0xff]  ;;  %v1250_v9 = vld [vmem:[#allocation5 + $0x68] sm:$0xff] }
  0x13   :  { %v1268_v3 = vld [vmem:[#allocation5 + $0xf8] sm:$0xff]  ;;  %727 = vmatpush.bf16.msra.mxu2 %v1260_v2  ;;  %v1267_v7 = vld [vmem:[#allocation5 + $0xf0] sm:$0xff]  ;;  %v1258_v10 = vld [vmem:[#allocation5 + $0xa8] sm:$0xff] }
  0x14   :  { %741 = vmatpush.bf16.msra.mxu3 %v1268_v3  ;;  %v1266_v11 = vld [vmem:[#allocation5 + $0xe8] sm:$0xff]  ;;  %v1241_v12 = vld [vmem:[#allocation5 + $0x20] sm:$0xff]  ;;  %v1240_v16 = vld [vmem:[#allocation5 + $0x18] sm:$0xff] }
  0x15   :  { %700 = vmatpush.bf16.msra.mxu0 %v1243_v4  ;;  %v1249_v13 = vld [vmem:[#allocation5 + $0x60] sm:$0xff]  ;;  %v219_v18 = vld [vmem:[#allocation2 + $0x10] sm:$0xff]  ;;  %v1248_v19 = vld [vmem:[#allocation5 + $0x58] sm:$0xff] }
  0x16   :  { %714 = vmatpush.bf16.msra.mxu1 %v1251_v5  ;;  %v1257_v14 = vld [vmem:[#allocation5 + $0xa0] sm:$0xff]  ;;  %v223_v21 = vld [vmem:[#allocation2 + $0x30] sm:$0xff]  ;;  %v1256_v22 = vld [vmem:[#allocation5 + $0x98] sm:$0xff]  ;;  %251 = vst [vmem:[#allocation1 + $0x1] ss:$4 sm:$0xff] %v219_v18 }
  0x17   :  { %728 = vmatpush.bf16.msra.mxu2 %v1259_v6  ;;  %v1265_v15 = vld [vmem:[#allocation5 + $0xe0] sm:$0xff]  ;;  %v1264_v23 = vld [vmem:[#allocation5 + $0xd8] sm:$0xff]  ;;  %255 = vst [vmem:[#allocation1 + $0x3] ss:$4 sm:$0xff] %v223_v21  ;;  %v1239_v24 = vld [vmem:[#allocation5 + $0x10] sm:$0xff] }
  0x18   :  { %742 = vmatpush.bf16.msra.mxu3 %v1267_v7  ;;  %v217_v17 = vld [vmem:[#allocation2] sm:$0xff]  ;;  %v1247_v25 = vld [vmem:[#allocation5 + $0x50] sm:$0xff]  ;;  %v1238_v28 = vld [vmem:[#allocation5 + $0x8] sm:$0xff] }
  0x19   :  { %701 = vmatpush.bf16.msra.mxu0 %v1242_v8  ;;  %v221_v20 = vld [vmem:[#allocation2 + $0x20] sm:$0xff]  ;;  %249 = vst [vmem:[#allocation1] ss:$4 sm:$0xff] %v217_v17  ;;  %v1255_v26 = vld [vmem:[#allocation5 + $0x90] sm:$0xff]  ;;  %v1246_v29 = vld [vmem:[#allocation5 + $0x48] sm:$0xff] }
  0x1a   :  { %715 = vmatpush.bf16.msra.mxu1 %v1250_v9  ;;  %253 = vst [vmem:[#allocation1 + $0x2] ss:$4 sm:$0xff] %v221_v20  ;;  %v1263_v27 = vld [vmem:[#allocation5 + $0xd0] sm:$0xff]  ;;  %v218_v30 = vld [vmem:[#allocation2 + $0x8] sm:$0xff]  ;;  %v220_v33 = vld [vmem:[#allocation2 + $0x18] sm:$0xff] }
  0x1b   :  { %729 = vmatpush.bf16.msra.mxu2 %v1258_v10  ;;  %v1254_v31 = vld [vmem:[#allocation5 + $0x88] sm:$0xff]  ;;  %257 = vst [vmem:[#allocation1 + $0x20] ss:$4 sm:$0xff] %v218_v30  ;;  %v225_v34 = vld [vmem:[#allocation2 + $0x40] sm:$0xff]  ;;  %v227_v35 = vld [vmem:[#allocation2 + $0x50] sm:$0xff] }
  0x1c   :  { %743 = vmatpush.bf16.msra.mxu3 %v1266_v11  ;;  %v1262_v32 = vld [vmem:[#allocation5 + $0xc8] sm:$0xff]  ;;  %v229_v36 = vld [vmem:[#allocation2 + $0x60] sm:$0xff]  ;;  %259 = vst [vmem:[#allocation1 + $0x21] ss:$4 sm:$0xff] %v220_v33  ;;  %v231_v44 = vld [vmem:[#allocation2 + $0x70] sm:$0xff] }
  0x1d   :  { %702 = vmatpush.bf16.msra.mxu0 %v1241_v12  ;;  %v1237_v37 = vld [vmem:[#allocation5] sm:$0xff]  ;;  %v1276_v46 = vld [vmem:[#allocation5 + $0x138] sm:$0xff]  ;;  %v222_v47 = vld [vmem:[#allocation2 + $0x28] sm:$0xff] }
  0x1e   :  { %716 = vmatpush.bf16.msra.mxu1 %v1249_v13  ;;  %v1245_v42 = vld [vmem:[#allocation5 + $0x40] sm:$0xff]  ;;  %v1284_v48 = vld [vmem:[#allocation5 + $0x178] sm:$0xff]  ;;  %261 = vst [vmem:[#allocation1 + $0x22] ss:$4 sm:$0xff] %v222_v47  ;;  %v1275_v52 = vld [vmem:[#allocation5 + $0x130] sm:$0xff] }
  0x1f   :  { %730 = vmatpush.bf16.msra.mxu2 %v1257_v14  ;;  %v1253_v43 = vld [vmem:[#allocation5 + $0x80] sm:$0xff]  ;;  %v224_v49 = vld [vmem:[#allocation2 + $0x38] sm:$0xff]  ;;  %v1283_v53 = vld [vmem:[#allocation5 + $0x170] sm:$0xff] }
  0x20   :  { %744 = vmatpush.bf16.msra.mxu3 %v1265_v15  ;;  %v1261_v45 = vld [vmem:[#allocation5 + $0xc0] sm:$0xff]  ;;  %v1292_v50 = vld [vmem:[#allocation5 + $0x1b8] sm:$0xff]  ;;  %263 = vst [vmem:[#allocation1 + $0x23] ss:$4 sm:$0xff] %v224_v49  ;;  %v1291_v54 = vld [vmem:[#allocation5 + $0x1b0] sm:$0xff] }
  0x21   :  { %703 = vmatpush.bf16.msra.mxu0 %v1240_v16  ;;  %v264_v38 = vld.sshfl [vmem:[#allocation1] sm:$0xff pattern:$0x73625140]  ;;  %v1471_v39 = vld.sshfl [vmem:[#allocation1 + $0x8] sm:$0xff pattern:$0x73625140] }
  0x22   :  { %717 = vmatpush.bf16.msra.mxu1 %v1248_v19  ;;  %v266_v40 = vld.sshfl [vmem:[#allocation1 + $0x10] sm:$0xff pattern:$0x73625140]  ;;  %v1473_v41 = vld.sshfl [vmem:[#allocation1 + $0x18] sm:$0xff pattern:$0x73625140] }
  0x23   :  { %731 = vmatpush.bf16.msra.mxu2 %v1256_v22  ;;  %272 = vst [vmem:[#allocation1] ss:$4 sm:$0xff] %v225_v34  ;;  %v1300_v51 = vld [vmem:[#allocation5 + $0x1f8] sm:$0xff]  ;;  %v1299_v55 = vld [vmem:[#allocation5 + $0x1f0] sm:$0xff]  ;;  %v1274_v56 = vld [vmem:[#allocation5 + $0x128] sm:$0xff] }
  0x24   :  { %745 = vmatpush.bf16.msra.mxu3 %v1264_v23  ;;  %273 = vst [vmem:[#allocation1 + $0x1] ss:$4 sm:$0xff] %v227_v35  ;;  %v1282_v57 = vld [vmem:[#allocation5 + $0x168] sm:$0xff]  ;;  %v228_v63 = vld [vmem:[#allocation2 + $0x58] sm:$0xff]  ;;  %v1273_v11 = vld [vmem:[#allocation5 + $0x120] sm:$0xff] }
  0x25   :  { %704 = vmatpush.bf16.msra.mxu0 %v1239_v24  ;;  %274 = vst [vmem:[#allocation1 + $0x2] ss:$4 sm:$0xff] %v229_v36  ;;  %v1290_v58 = vld [vmem:[#allocation5 + $0x1a8] sm:$0xff]  ;;  %v1281_v12 = vld [vmem:[#allocation5 + $0x160] sm:$0xff]  ;;  %v232_v13 = vld [vmem:[#allocation2 + $0x78] sm:$0xff] }
  0x26   :  { %718 = vmatpush.bf16.msra.mxu1 %v1247_v25  ;;  %275 = vst [vmem:[#allocation1 + $0x3] ss:$4 sm:$0xff] %v231_v44  ;;  %v1298_v59 = vld [vmem:[#allocation5 + $0x1e8] sm:$0xff]  ;;  %v1289_v14 = vld [vmem:[#allocation5 + $0x1a0] sm:$0xff]  ;;  %v1272_v16 = vld [vmem:[#allocation5 + $0x118] sm:$0xff] }
  0x27   :  { %732 = vmatpush.bf16.msra.mxu2 %v1255_v26  ;;  %v226_v60 = vld [vmem:[#allocation2 + $0x48] sm:$0xff]  ;;  %v1477_v7 = vld.sshfl [vmem:[#allocation1 + $0x20] sm:$0xff pattern:$0x73625140]  ;;  %v1297_v15 = vld [vmem:[#allocation5 + $0x1e0] sm:$0xff] }
  0x28   :  { %746 = vmatpush.bf16.msra.mxu3 %v1263_v27  ;;  %v230_v4 = vld [vmem:[#allocation2 + $0x68] sm:$0xff]  ;;  %v1479_v8 = vld.sshfl [vmem:[#allocation1 + $0x28] sm:$0xff pattern:$0x73625140]  ;;  %v1280_v17 = vld [vmem:[#allocation5 + $0x158] sm:$0xff] }
  0x29   :  { %705 = vmatpush.bf16.msra.mxu0 %v1238_v28  ;;  %v1481_v9 = vld.sshfl [vmem:[#allocation1 + $0x30] sm:$0xff pattern:$0x73625140]  ;;  %v1483_v10 = vld.sshfl [vmem:[#allocation1 + $0x38] sm:$0xff pattern:$0x73625140] }
  0x2a   :  { %719 = vmatpush.bf16.msra.mxu1 %v1246_v29  ;;  %276 = vst [vmem:[#allocation1 + $0x20] ss:$4 sm:$0xff] %v226_v60  ;;  %v1288_v18 = vld [vmem:[#allocation5 + $0x198] sm:$0xff]  ;;  %v1271_v20 = vld [vmem:[#allocation5 + $0x110] sm:$0xff]  ;;  %v1270_v24 = vld [vmem:[#allocation5 + $0x108] sm:$0xff] }
  0x2b   :  { %733 = vmatpush.bf16.msra.mxu2 %v1254_v31  ;;  %277 = vst [vmem:[#allocation1 + $0x21] ss:$4 sm:$0xff] %v228_v63  ;;  %v1296_v19 = vld [vmem:[#allocation5 + $0x1d8] sm:$0xff]  ;;  %v1279_v21 = vld [vmem:[#allocation5 + $0x150] sm:$0xff]  ;;  %v1278_v25 = vld [vmem:[#allocation5 + $0x148] sm:$0xff] }
  0x2c   :  { %747 = vmatpush.bf16.msra.mxu3 %v1262_v32  ;;  %278 = vst [vmem:[#allocation1 + $0x22] ss:$4 sm:$0xff] %v230_v4  ;;  %v1287_v22 = vld [vmem:[#allocation5 + $0x190] sm:$0xff]  ;;  %v1286_v26 = vld [vmem:[#allocation5 + $0x188] sm:$0xff]  ;;  %v1269_v28 = vld [vmem:[#allocation5 + $0x100] sm:$0xff] }
  0x2d   :  { %706 = vmatpush.bf16.msra.mxu0 %v1237_v37  ;;  %v282_v61 = vld.sshfl [vmem:[#allocation1 + $0x10] sm:$0xff pattern:$0x73625140]  ;;  %v280_v62 = vld.sshfl [vmem:[#allocation1] sm:$0xff pattern:$0x73625140] }
  0x2e   :  { %720 = vmatpush.bf16.msra.mxu1 %v1245_v42  ;;  %v306_v0 = vpack.c.bf16 %v282_v61, %v266_v40  ;;  %v304_v1 = vpack.c.bf16 %v280_v62, %v264_v38  ;;  %v283_v2 = vld.sshfl [vmem:[#allocation1 + $0x18] sm:$0xff pattern:$0x73625140]  ;;  %v281_v3 = vld.sshfl [vmem:[#allocation1 + $0x8] sm:$0xff pattern:$0x73625140] }
  0x2f   :  { %734 = vmatpush.bf16.msra.mxu2 %v1253_v43  ;;  %v307_v5 = vpack.c.bf16 %v283_v2, %v1473_v41  ;;  %v305_v6 = vpack.c.bf16 %v281_v3, %v1471_v39  ;;  %279 = vst [vmem:[#allocation1 + $0x23] ss:$4 sm:$0xff] %v232_v13  ;;  %v1295_v23 = vld [vmem:[#allocation5 + $0x1d0] sm:$0xff]  ;;  %v1294_v27 = vld [vmem:[#allocation5 + $0x1c8] sm:$0xff]  ;;  %v1277_v29 = vld [vmem:[#allocation5 + $0x140] sm:$0xff] }
  0x30   :  { %748 = vmatpush.bf16.msra.mxu3 %v1261_v45  ;;  %707 = vmatmul.bf16.vlgmr.msra.gmra.mxu0 %v304_v1  ;;  %v1285_v30 = vld [vmem:[#allocation5 + $0x180] sm:$0xff]  ;;  %v1308_v40 = vld [vmem:[#allocation7 + $0x38] sm:$0xff]  ;;  %v1307_v41 = vld [vmem:[#allocation7 + $0x30] sm:$0xff] }
  0x31   :  { %755 = vmatpush.bf16.msrb.mxu0 %v1276_v46  ;;  %721 = vmatmul.bf16.vlgmr.msra.gmra.mxu1 %v305_v6  ;;  %v1293_v31 = vld [vmem:[#allocation5 + $0x1c0] sm:$0xff]  ;;  %v1306_v42 = vld [vmem:[#allocation7 + $0x28] sm:$0xff]  ;;  %v1304_v44 = vld [vmem:[#allocation7 + $0x18] sm:$0xff] }
  0x32   :  { %769 = vmatpush.bf16.msrb.mxu1 %v1284_v48  ;;  %735 = vmatmul.bf16.vlgmr.msra.gmra.mxu2 %v306_v0  ;;  %v1305_v43 = vld [vmem:[#allocation7 + $0x20] sm:$0xff]  ;;  %v1303_v45 = vld [vmem:[#allocation7 + $0x10] sm:$0xff]  ;;  %v1302_v47 = vld [vmem:[#allocation7 + $0x8] sm:$0xff] }
  0x33   :  { %783 = vmatpush.bf16.msrb.mxu2 %v1292_v50  ;;  %749 = vmatmul.bf16.vlgmr.msra.gmra.mxu3 %v307_v5  ;;  %v1301_v49 = vld [vmem:[#allocation7] sm:$0xff]  ;;  %v1318_v50 = vld [vmem:[%s1510_s2] ss:$0 sm:$0xff] }
  0x34   :  { %797 = vmatpush.bf16.msrb.mxu3 %v1300_v51 }
  0x35   :  { %756 = vmatpush.bf16.msrb.mxu0 %v1275_v52 }
  0x36   :  { %770 = vmatpush.bf16.msrb.mxu1 %v1283_v53  ;;  %v284_v32 = vld.sshfl [vmem:[#allocation1 + $0x20] sm:$0xff pattern:$0x73625140]  ;;  %v285_v33 = vld.sshfl [vmem:[#allocation1 + $0x28] sm:$0xff pattern:$0x73625140] }
  0x37   :  { %784 = vmatpush.bf16.msrb.mxu2 %v1291_v54  ;;  %v286_v34 = vld.sshfl [vmem:[#allocation1 + $0x30] sm:$0xff pattern:$0x73625140]  ;;  %v287_v35 = vld.sshfl [vmem:[#allocation1 + $0x38] sm:$0xff pattern:$0x73625140]  ;;  %v308_v36 = vpack.c.bf16 %v284_v32, %v1477_v7  ;;  %v309_v37 = vpack.c.bf16 %v285_v33, %v1479_v8 }
  0x38   :  { %798 = vmatpush.bf16.msrb.mxu3 %v1299_v55  ;;  %v310_v38 = vpack.c.bf16 %v286_v34, %v1481_v9  ;;  %v311_v39 = vpack.c.bf16 %v287_v35, %v1483_v10 }
  0x39   :  { %757 = vmatpush.bf16.msrb.mxu0 %v1274_v56 }
  0x3a   :  { %771 = vmatpush.bf16.msrb.mxu1 %v1282_v57 }
  0x3b   :  { %785 = vmatpush.bf16.msrb.mxu2 %v1290_v58 }
  0x3c   :  { %799 = vmatpush.bf16.msrb.mxu3 %v1298_v59 }
  0x3d   :  { %758 = vmatpush.bf16.msrb.mxu0 %v1273_v11 }
  0x3e   :  { %772 = vmatpush.bf16.msrb.mxu1 %v1281_v12 }
  0x3f   :  { %786 = vmatpush.bf16.msrb.mxu2 %v1289_v14 }
  0x40   :  { %800 = vmatpush.bf16.msrb.mxu3 %v1297_v15 }
  0x41   :  { %759 = vmatpush.bf16.msrb.mxu0 %v1272_v16 }
  0x42   :  { %773 = vmatpush.bf16.msrb.mxu1 %v1280_v17 }
  0x43   :  { %787 = vmatpush.bf16.msrb.mxu2 %v1288_v18 }
  0x44   :  { %801 = vmatpush.bf16.msrb.mxu3 %v1296_v19 }
  0x45   :  { %760 = vmatpush.bf16.msrb.mxu0 %v1271_v20  ;;  %v1319_v20 = vld [vmem:[%s1512_s4] ss:$0 sm:$0xff] }
  0x46   :  { %774 = vmatpush.bf16.msrb.mxu1 %v1279_v21 }
  0x47   :  { %788 = vmatpush.bf16.msrb.mxu2 %v1287_v22 }
  0x48   :  { %802 = vmatpush.bf16.msrb.mxu3 %v1295_v23 }
  0x49   :  { %761 = vmatpush.bf16.msrb.mxu0 %v1270_v24 }
  0x4a   :  { %775 = vmatpush.bf16.msrb.mxu1 %v1278_v25 }
  0x4b   :  { %789 = vmatpush.bf16.msrb.mxu2 %v1286_v26 }
  0x4c   :  { %803 = vmatpush.bf16.msrb.mxu3 %v1294_v27 }
  0x4d   :  { %762 = vmatpush.bf16.msrb.mxu0 %v1269_v28 }
  0x4e   :  { %776 = vmatpush.bf16.msrb.mxu1 %v1277_v29 }
  0x4f   :  { %790 = vmatpush.bf16.msrb.mxu2 %v1285_v30 }
  0x50   :  { %804 = vmatpush.bf16.msrb.mxu3 %v1293_v31  ;;  %763 = vmatmul.bf16.vlgmr.msrb.gmra.mxu0 %v308_v36 }
  0x51   :  { %777 = vmatmul.bf16.vlgmr.msrb.gmra.mxu1 %v309_v37  ;;  %865 = vmatpush.bf16.msra.mxu0 %v1308_v40 }
  0x52   :  { %791 = vmatmul.bf16.vlgmr.msrb.gmra.mxu2 %v310_v38 }
  0x53   :  { %805 = vmatmul.bf16.vlgmr.msrb.gmra.mxu3 %v311_v39 }
  0x55   :  { %866 = vmatpush.bf16.msra.mxu0 %v1307_v41 }
  0x59   :  { %867 = vmatpush.bf16.msra.mxu0 %v1306_v42 }
  0x5d   :  { %868 = vmatpush.bf16.msra.mxu0 %v1305_v43 }
  0x61   :  { %869 = vmatpush.bf16.msra.mxu0 %v1304_v44 }
  0x65   :  { %870 = vmatpush.bf16.msra.mxu0 %v1303_v45 }
  0x69   :  { %871 = vmatpush.bf16.msra.mxu0 %v1302_v47 }
  0x6d   :  { %872 = vmatpush.bf16.msra.mxu0 %v1301_v49 }
  0xad   :  { %v708_v46 = vpop.f32.mrf.mxu0 }
  0xae   :  { %v722_v48 = vpop.f32.mrf.mxu1  ;;  %v709_v53 = vadd.f32 %v1318_v50, %v708_v46 }
  0xb0   :  { %v723_v56 = vadd.f32 %v722_v48, %v709_v53 }
  0xb5   :  { %v736_v51 = vpop.f32.mrf.mxu2  ;;  %v710_v54 = vpop.f32.mrf.mxu0 }
  0xb6   :  { %v750_v52 = vpop.f32.mrf.mxu3  ;;  %v724_v55 = vpop.f32.mrf.mxu1  ;;  %v711_v57 = vadd.f32 %v1318_v50, %v710_v54  ;;  %v737_v60 = vadd.f32 %v736_v51, %v723_v56 }
  0xb8   :  { %v725_v61 = vadd.f32 %v724_v55, %v711_v57  ;;  %v751_v0 = vadd.f32 %v750_v52, %v737_v60 }
  0xbd   :  { %v738_v58 = vpop.f32.mrf.mxu2 }
  0xbe   :  { %v752_v59 = vpop.f32.mrf.mxu3  ;;  %v739_v1 = vadd.f32 %v738_v58, %v725_v61 }
  0xc0   :  { %v753_v5 = vadd.f32 %v752_v59, %v739_v1 }
  0xcd   :  { %v764_v62 = vpop.f32.mrf.mxu0 }
  0xce   :  { %v778_v63 = vpop.f32.mrf.mxu1  ;;  %v765_v2 = vadd.f32 %v764_v62, %v751_v0 }
  0xd0   :  { %v779_v7 = vadd.f32 %v778_v63, %v765_v2 }
  0xd5   :  { %v792_v3 = vpop.f32.mrf.mxu2  ;;  %v766_v6 = vpop.f32.mrf.mxu0 }
  0xd6   :  { %v806_v4 = vpop.f32.mrf.mxu3  ;;  %v767_v8 = vadd.f32 %v766_v6, %v753_v5  ;;  %v793_v9 = vadd.f32 %v792_v3, %v779_v7  ;;  %v780_v10 = vpop.f32.mrf.mxu1 }
  0xd8   :  { %v781_v11 = vadd.f32 %v780_v10, %v767_v8  ;;  %v807_v13 = vadd.f32 %v806_v4, %v793_v9 }
  0xda   :  { %v811_v17 = vmax.f32 %v807_v13, 0.0 }
  0xdd   :  { %v794_v12 = vpop.f32.mrf.mxu2 }
  0xde   :  { %v795_v14 = vadd.f32 %v794_v12, %v781_v11  ;;  %v808_v15 = vpop.f32.mrf.mxu3 }
  0xe0   :  { %v809_v16 = vadd.f32 %v808_v15, %v795_v14 }
  0xe2   :  { %v812_v18 = vmax.f32 %v809_v16, 0.0 }
  0xe4   :  { %v813_v19 = vpack.c.bf16 %v812_v18, %v811_v17 }
  0xe6   :  { %873 = vmatmul.bf16.vlgmr.msra.gmra.mxu0 %v813_v19 }
 0x163   :  { %v874_v21 = vpop.f32.mrf.mxu0 }
 0x164   :  { %v875_v22 = vadd.f32 %v1319_v20, %v874_v21 }
 0x166   :  { %v879_v23 = vpack.c.bf16 %v875_v22, %v875_v22 }
 0x168   :  { %v883_v24 = vrot.slane %v879_v23, 3 }
 0x16a   :  { %v888_v25 = vsel %vm885_vm0, %v879_v23, %v883_v24  ;;  %v890_v26 = vsel %vm889_vm1, %v879_v23, %v883_v24  ;;  %v894_v27 = vsel %vm893_vm2, %v879_v23, %v883_v24  ;;  %v898_v28 = vsel %vm897_vm3, %v879_v23, %v883_v24 }
 0x16b   :  { %v892_v29 = vrot.slane %v890_v26, 1  ;;  %v896_v30 = vrot.slane %v894_v27, 2  ;;  %v900_v31 = vrot.slane %v898_v28, 3  ;;  %921 = vst [vmem:[#allocation8] sm:$0x1] %v888_v25  ;;  %v876_v32 = vpop.f32.mrf.mxu0 }
 0x16c   :  { %v877_v33 = vadd.f32 %v1319_v20, %v876_v32 }
 0x16d   :  { %922 = vst [vmem:[#allocation8 + $0x1] sm:$0x1] %v892_v29 }
 0x16e   :  { %923 = vst [vmem:[#allocation8 + $0x2] sm:$0x1] %v896_v30  ;;  %v880_v34 = vpack.c.bf16 %v877_v33, %v877_v33 }
 0x16f   :  { %924 = vst [vmem:[#allocation8 + $0x3] sm:$0x1] %v900_v31 }
 0x170   :  { %v884_v35 = vrot.slane %v880_v34, 3 }
 0x172   :  { %v903_v36 = vsel %vm885_vm0, %v880_v34, %v884_v35  ;;  %v904_v37 = vsel %vm889_vm1, %v880_v34, %v884_v35  ;;  %v907_v38 = vsel %vm893_vm2, %v880_v34, %v884_v35  ;;  %v910_v39 = vsel %vm897_vm3, %v880_v34, %v884_v35 }
 0x173   :  { %v906_v40 = vrot.slane %v904_v37, 1  ;;  %v909_v41 = vrot.slane %v907_v38, 2  ;;  %v912_v42 = vrot.slane %v910_v39, 3  ;;  %925 = vst [vmem:[#allocation8 + $0x4] sm:$0x1] %v903_v36 }
 0x175   :  { %926 = vst [vmem:[#allocation8 + $0x5] sm:$0x1] %v906_v40 }
 0x176   :  { %927 = vst [vmem:[#allocation8 + $0x6] sm:$0x1] %v909_v41 }
 0x177   :  { %928 = vst [vmem:[#allocation8 + $0x7] sm:$0x1] %v912_v42 }
 0x178   :  { %932 = vsyncadd [#allocation4], 112  ;;  %s935_s13 = sshll.u32 %s1513_s5, 4  ;;  %s1429_s14 = smov [#allocation8]   ;;  %s936_s13 = int_to_ptr.hbm [resolvable:$true] %s935_s13 }
 0x179   :  { %s933_s15 = sshll.u32 %s1429_s14, 4  ;;  %s1430_s16 = smov 1   ;;  %s934_s15 = int_to_ptr.vmem [resolvable:$true] %s933_s15 }
 0x17a   :  { %941 = dma.vmem_to_hbm [thread:$0]  %s934_s15, 16, %s936_s13, [#allocation4], %s1427_s6, %s1427_s6, %s1430_s16  }
 0x17b   :  { %1420 = dma.done.wait [#allocation4], 128  }
 0x17c   :  { %1421 = vsyncadd [#allocation4], 4294967168 }
 0x17d   :  { %946 = vsyncpa [#allocation3], 1 }
 0x17e   :  { %947 = vsyncpa [#allocation6], 1 }
 0x17f   :  { %948 = vsyncpa [#allocation4], 1 }

</bundles_post_ra>
